<compile_context>
chip_gen: v7x
topology: tpu7x:2x2x1
jax: 0.10.0
libtpu: 0.0.40
codegen_flags: <defaults>
</compile_context>

<pallas_src>
import functools
import math

import jax
import jax.numpy as jnp
from jax.experimental import pallas as pl
from jax.experimental.pallas import tpu as pltpu


# ----------------------------- Pallas kernels -------------------------------

def _dense_kernel(x_ref, w_ref, b_ref, o_ref, acc_ref, *, act):
    """Tiled matmul with bf16 MXU inputs and f32 accumulation."""
    @pl.when(pl.program_id(2) == 0)
    def _():
        acc_ref[...] = jnp.zeros_like(acc_ref)

    acc_ref[...] += jnp.dot(x_ref[...].astype(jnp.bfloat16),
                            w_ref[...].astype(jnp.bfloat16),
                            preferred_element_type=jnp.float32)

    @pl.when(pl.program_id(2) == pl.num_programs(2) - 1)
    def _():
        y = acc_ref[...] + b_ref[...].astype(jnp.float32)
        if act == "gelu":
            # TODO(synk): HF BERT uses erf-gelu; tanh-approximate gelu used here.
            y = jax.nn.gelu(y, approximate=True)
        o_ref[...] = y.astype(o_ref.dtype)


def _layernorm_kernel(x_ref, g_ref, b_ref, o_ref):
    x = x_ref[...].astype(jnp.float32)
    mean = jnp.mean(x, axis=-1, keepdims=True)
    var = jnp.mean(jnp.square(x - mean), axis=-1, keepdims=True)
    y = (x - mean) * jax.lax.rsqrt(var + 1e-12)
    o_ref[...] = (y * g_ref[...] + b_ref[...]).astype(o_ref.dtype)


def _add_layernorm_kernel(x_ref, r_ref, g_ref, b_ref, o_ref):
    # residual add fused into layernorm: saves one HBM round trip per use
    x = x_ref[...].astype(jnp.float32) + r_ref[...].astype(jnp.float32)
    mean = jnp.mean(x, axis=-1, keepdims=True)
    var = jnp.mean(jnp.square(x - mean), axis=-1, keepdims=True)
    y = (x - mean) * jax.lax.rsqrt(var + 1e-12)
    o_ref[...] = (y * g_ref[...] + b_ref[...]).astype(o_ref.dtype)


def _attention_kernel(prefix_ref, qkv_ref, o_ref, *, n_heads, scale):
    # qkv block: (1, S, 3H) — all heads of one batch element handled per call;
    # mask built in-kernel from the prefix scalar (no [B,S,S] HBM traffic).
    s, h3 = qkv_ref.shape[1], qkv_ref.shape[2]
    h = h3 // 3
    dh = h // n_heads
    qkv = qkv_ref[0].astype(jnp.float32)            # [S, 3H]

    prefix = prefix_ref[0]
    row = jax.lax.broadcasted_iota(jnp.int32, (s, s), 0)
    col = jax.lax.broadcasted_iota(jnp.int32, (s, s), 1)
    allowed = (col < prefix) | ((row >= prefix) & (col >= prefix) & (col <= row))
    bias = jnp.where(allowed, 0.0, -10000.0)        # BERT extended attention mask

    # TODO(synk): for realistic S this should become a flash-style tq/tk-blocked
    # kernel with an online-softmax accumulator instead of a full [S,S] score tile.
    ctx_heads = []
    for head in range(n_heads):                     # static unroll over heads
        q = qkv[:, head * dh:(head + 1) * dh]
        k = qkv[:, h + head * dh: h + (head + 1) * dh]
        v = qkv[:, 2 * h + head * dh: 2 * h + (head + 1) * dh]
        scores = jnp.dot(q.astype(jnp.bfloat16), k.astype(jnp.bfloat16).T,
                         preferred_element_type=jnp.float32) * scale
        scores = scores + bias
        scores = scores - jnp.max(scores, axis=-1, keepdims=True)
        p = jnp.exp(scores)
        p = p * pl.reciprocal(jnp.sum(p, axis=-1, keepdims=True), approx=True)
        ctx_heads.append(jnp.dot(p.astype(jnp.bfloat16), v.astype(jnp.bfloat16),
                                 preferred_element_type=jnp.float32))
    o_ref[0] = jnp.concatenate(ctx_heads, axis=-1).astype(o_ref.dtype)


def _softmax_kernel(x_ref, o_ref):
    x = x_ref[...].astype(jnp.float32)
    x = x - jnp.max(x, axis=-1, keepdims=True)
    e = jnp.exp(x)
    # exact normalization kept here so final probabilities sum to 1 tightly
    o_ref[...] = (e / jnp.sum(e, axis=-1, keepdims=True)).astype(o_ref.dtype)


def _ce_kernel(logits_ref, tgt_ref, loss_ref, nll_acc, cnt_acc, *, n_rows, tm):
    # row-tiled masked cross entropy, ignore_index = 0, mean over valid rows
    i = pl.program_id(0)

    @pl.when(i == 0)
    def _():
        nll_acc[...] = jnp.zeros_like(nll_acc)
        cnt_acc[...] = jnp.zeros_like(cnt_acc)

    logits = logits_ref[...].astype(jnp.float32)
    tgt = tgt_ref[...]
    rows, v = logits.shape
    m = jnp.max(logits, axis=-1, keepdims=True)
    lse = jnp.log(jnp.sum(jnp.exp(logits - m), axis=-1, keepdims=True)) + m
    onehot = (jax.lax.broadcasted_iota(jnp.int32, (rows, v), 1) == tgt).astype(jnp.float32)
    tgt_logit = jnp.sum(logits * onehot, axis=-1, keepdims=True)
    nll = lse - tgt_logit
    rid = i * tm + jax.lax.broadcasted_iota(jnp.int32, (rows, 1), 0)
    valid = ((tgt != 0) & (rid < n_rows)).astype(jnp.float32)   # also masks padded rows
    nll_acc[...] += jnp.sum(nll * valid, keepdims=True)
    cnt_acc[...] += jnp.sum(valid, keepdims=True)

    @pl.when(i == pl.num_programs(0) - 1)
    def _():
        loss_ref[...] = nll_acc[...] / jnp.maximum(cnt_acc[...], 1.0)


# ------------------------------ kernel wrappers ------------------------------

def dense(x, w, b, act="none", tm=256, tn=256, tk=512):
    m, k = x.shape
    n = w.shape[1]
    tm = min(m, tm)                                # 256 is 8-aligned; else full dim
    tn = min(n, tn)                                # 256 is 128-aligned; else full dim
    tk = tk if (k > tk and k % tk == 0) else k     # avoid garbage in padded K blocks
    grid = (pl.cdiv(m, tm), pl.cdiv(n, tn), pl.cdiv(k, tk))
    return pl.pallas_call(
        functools.partial(_dense_kernel, act=act),
        out_shape=jax.ShapeDtypeStruct((m, n), jnp.float32),
        grid=grid,
        in_specs=[pl.BlockSpec((tm, tk), lambda i, j, kk: (i, kk)),
                  pl.BlockSpec((tk, tn), lambda i, j, kk: (kk, j)),
                  pl.BlockSpec((1, tn), lambda i, j, kk: (0, j))],
        out_specs=pl.BlockSpec((tm, tn), lambda i, j, kk: (i, j)),
        scratch_shapes=[pltpu.VMEM((tm, tn), jnp.float32)],
        compiler_params=pltpu.CompilerParams(
            dimension_semantics=("parallel", "parallel", "arbitrary")),
    )(x, w, b.reshape(1, n))


def layernorm(x, g, b, block_rows=256):
    m, h = x.shape
    tm = min(m, block_rows)
    return pl.pallas_call(
        _layernorm_kernel,
        out_shape=jax.ShapeDtypeStruct((m, h), jnp.float32),
        grid=(pl.cdiv(m, tm),),
        in_specs=[pl.BlockSpec((tm, h), lambda i: (i, 0)),
                  pl.BlockSpec((1, h), lambda i: (0, 0)),
                  pl.BlockSpec((1, h), lambda i: (0, 0))],
        out_specs=pl.BlockSpec((tm, h), lambda i: (i, 0)),
        compiler_params=pltpu.CompilerParams(dimension_semantics=("parallel",)),
    )(x, g.reshape(1, h), b.reshape(1, h))


def add_layernorm(x, r, g, b, block_rows=256):
    m, h = x.shape
    tm = min(m, block_rows)
    return pl.pallas_call(
        _add_layernorm_kernel,
        out_shape=jax.ShapeDtypeStruct((m, h), jnp.float32),
        grid=(pl.cdiv(m, tm),),
        in_specs=[pl.BlockSpec((tm, h), lambda i: (i, 0)),
                  pl.BlockSpec((tm, h), lambda i: (i, 0)),
                  pl.BlockSpec((1, h), lambda i: (0, 0)),
                  pl.BlockSpec((1, h), lambda i: (0, 0))],
        out_specs=pl.BlockSpec((tm, h), lambda i: (i, 0)),
        compiler_params=pltpu.CompilerParams(dimension_semantics=("parallel",)),
    )(x, r, g.reshape(1, h), b.reshape(1, h))


def attention(qkv, prefix, *, n_heads, scale):
    b, s, h3 = qkv.shape
    h = h3 // 3
    return pl.pallas_call(
        functools.partial(_attention_kernel, n_heads=n_heads, scale=scale),
        out_shape=jax.ShapeDtypeStruct((b, s, h), jnp.float32),
        grid_spec=pltpu.PrefetchScalarGridSpec(
            num_scalar_prefetch=1, grid=(b,),
            in_specs=[pl.BlockSpec((1, s, h3), lambda bi, pref: (bi, 0, 0))],
            out_specs=pl.BlockSpec((1, s, h), lambda bi, pref: (bi, 0, 0))),
        compiler_params=pltpu.CompilerParams(dimension_semantics=("parallel",)),
    )(prefix, qkv)


def softmax_rows(x, block_rows=256):
    m, v = x.shape
    tm = min(m, block_rows)
    return pl.pallas_call(
        _softmax_kernel,
        out_shape=jax.ShapeDtypeStruct((m, v), jnp.float32),
        grid=(pl.cdiv(m, tm),),
        in_specs=[pl.BlockSpec((tm, v), lambda i: (i, 0))],
        out_specs=pl.BlockSpec((tm, v), lambda i: (i, 0)),
        compiler_params=pltpu.CompilerParams(dimension_semantics=("parallel",)),
    )(x)


def cross_entropy(logits, targets, block_rows=256):
    n, v = logits.shape
    tm = min(n, block_rows)
    return pl.pallas_call(
        functools.partial(_ce_kernel, n_rows=n, tm=tm),
        out_shape=jax.ShapeDtypeStruct((1, 1), jnp.float32),
        grid=(pl.cdiv(n, tm),),
        in_specs=[pl.BlockSpec((tm, v), lambda i: (i, 0)),
                  pl.BlockSpec((tm, 1), lambda i: (i, 0))],
        out_specs=pl.BlockSpec((1, 1), lambda i: (0, 0)),
        scratch_shapes=[pltpu.VMEM((1, 1), jnp.float32),
                        pltpu.VMEM((1, 1), jnp.float32)],
        compiler_params=pltpu.CompilerParams(dimension_semantics=("arbitrary",)),
    )(logits, targets.reshape(n, 1).astype(jnp.int32))[0, 0]


# ------------------------------- model pieces --------------------------------

def init_params(key, vocab_size, hidden, n_layers, intermediate, max_pos):
    keys = iter(jax.random.split(key, 8 + 8 * n_layers))

    def nrm(shape):
        return jax.random.normal(next(keys), shape, jnp.float32) * 0.02

    params = {
        "word_emb": nrm((vocab_size, hidden)),
        "pos_emb": nrm((max_pos, hidden)),
        "type_emb": nrm((2, hidden)),
        "emb_ln_g": jnp.ones((hidden,), jnp.float32),
        "emb_ln_b": jnp.zeros((hidden,), jnp.float32),
        "cls_w": nrm((hidden, vocab_size)),
        "cls_b": jnp.zeros((vocab_size,), jnp.float32),
        "layers": [],
    }
    for _ in range(n_layers):
        params["layers"].append({
            # Q/K/V fused into one [H, 3H] projection (one launch, one HBM read of h)
            "qkv_w": nrm((hidden, 3 * hidden)),
            "qkv_b": jnp.zeros((3 * hidden,), jnp.float32),
            "o_w": nrm((hidden, hidden)), "o_b": jnp.zeros((hidden,), jnp.float32),
            "ln1_g": jnp.ones((hidden,), jnp.float32), "ln1_b": jnp.zeros((hidden,), jnp.float32),
            "ffn_w1": nrm((hidden, intermediate)), "ffn_b1": jnp.zeros((intermediate,), jnp.float32),
            "ffn_w2": nrm((intermediate, hidden)), "ffn_b2": jnp.zeros((hidden,), jnp.float32),
            "ln2_g": jnp.ones((hidden,), jnp.float32), "ln2_b": jnp.zeros((hidden,), jnp.float32),
        })
    return params


def bert_encoder(params, x_ids, prefix, *, n_heads):
    b, s = x_ids.shape
    hdim = params["word_emb"].shape[1]
    scale = 1.0 / math.sqrt(hdim // n_heads)

    # embeddings (gathers / adds are glue)
    emb = (jnp.take(params["word_emb"], x_ids, axis=0)
           + params["pos_emb"][None, :s, :]
           + params["type_emb"][0][None, None, :])
    h = layernorm(emb.reshape(b * s, hdim), params["emb_ln_g"], params["emb_ln_b"])

    for layer in params["layers"]:
        qkv = dense(h, layer["qkv_w"], layer["qkv_b"])                # [B*S, 3H]
        ctx = attention(qkv.reshape(b, s, 3 * hdim), prefix,
                        n_heads=n_heads, scale=scale)                 # [B, S, H]
        attn_out = dense(ctx.reshape(b * s, hdim), layer["o_w"], layer["o_b"])
        a = add_layernorm(attn_out, h, layer["ln1_g"], layer["ln1_b"])
        ffn = dense(dense(a, layer["ffn_w1"], layer["ffn_b1"], act="gelu"),
                    layer["ffn_w2"], layer["ffn_b2"])
        h = add_layernorm(ffn, a, layer["ln2_g"], layer["ln2_b"])
    # TODO(synk): BERT pooler output is never used by LanguageModel.forward, so it is omitted.
    return h.reshape(b, s, hdim)


def language_model_forward(params, x, y=None, *, n_heads, prefix_len):
    b, s = x.shape
    hdim, vocab_size = params["cls_w"].shape

    # prefix == S -> mask allows everything (BERT default all-ones mask when y is None)
    prefix = jnp.array([prefix_len if y is not None else s], jnp.int32)
    h = bert_encoder(params, x, prefix, n_heads=n_heads)              # [B, S, H]
    logits = dense(h.reshape(b * s, hdim), params["cls_w"], params["cls_b"])

    if y is not None:
        sel = logits.reshape(b, s, vocab_size)[:, prefix_len:, :].reshape(-1, vocab_size)
        # TODO(synk): CE could be fused with the classifier matmul so logits never hit HBM.
        return cross_entropy(sel, y.reshape(-1))
    return softmax_rows(logits).reshape(b, s, vocab_size)


# ----------------------------------- main ------------------------------------

if __name__ == "__main__":
    B, PREFIX, GEN = 2, 4, 8
    S = PREFIX + GEN
    VOCAB, HIDDEN, N_LAYERS, N_HEADS, INTER = 64, 32, 2, 2, 64

    key = jax.random.PRNGKey(0)
    pkey, xkey, ykey = jax.random.split(key, 3)

    params = init_params(pkey, VOCAB, HIDDEN, N_LAYERS, INTER, max_pos=64)
    x = jax.random.randint(xkey, (B, S), 1, VOCAB, dtype=jnp.int32)
    y = jax.random.randint(ykey, (B, GEN), 1, VOCAB, dtype=jnp.int32)
    y = y.at[0, 0].set(0)  # exercise ignore_index=0

    loss = language_model_forward(params, x, y, n_heads=N_HEADS, prefix_len=PREFIX)
    probs = language_model_forward(params, x, None, n_heads=N_HEADS, prefix_len=PREFIX)
    jax.block_until_ready((loss, probs))

    assert loss.shape == () and bool(jnp.isfinite(loss))
    assert probs.shape == (B, S, VOCAB)
    assert bool(jnp.allclose(jnp.sum(probs, axis=-1), 1.0, atol=1e-4))
    print("KERNEL_OK")
</pallas_src>

<mosaic_0001>
module attributes {stable_mosaic.version = 11 : i64} {
  func.func @_layernorm_kernel(%arg0: i32, %arg1: memref<24x32xf32, #tpu.memory_space<vmem>>, %arg2: memref<1x32xf32, #tpu.memory_space<vmem>>, %arg3: memref<1x32xf32, #tpu.memory_space<vmem>>, %arg4: memref<24x32xf32, #tpu.memory_space<vmem>>) attributes {dimension_semantics = [#tpu.dimension_semantics<parallel>], iteration_bounds = array<i64: 1>, scalar_prefetch = 0 : i64, scratch_operands = 0 : i64, tpu.core_type = #tpu.core_type<tc>, window_params = [{transform_indices = @transform_0, window_bounds = array<i64: 24, 32>}, {pipeline_mode = #tpu.pipeline_mode<synchronous>, transform_indices = @transform_1, window_bounds = array<i64: 1, 32>}, {pipeline_mode = #tpu.pipeline_mode<synchronous>, transform_indices = @transform_2, window_bounds = array<i64: 1, 32>}, {transform_indices = @transform_3, window_bounds = array<i64: 24, 32>}]} {
    %c0 = arith.constant 0 : index
    %c0_0 = arith.constant 0 : index
    %0 = vector.load %arg1[%c0, %c0_0] : memref<24x32xf32, #tpu.memory_space<vmem>>, vector<24x32xf32>
    %cst = arith.constant dense<0.000000e+00> : vector<24xf32>
    %1 = vector.multi_reduction <add>, %0, %cst [1] : vector<24x32xf32> to vector<24xf32>
    %2 = vector.shape_cast %1 : vector<24xf32> to vector<24x1xf32>
    %cst_1 = arith.constant 3.200000e+01 : f32
    %3 = vector.broadcast %cst_1 : f32 to vector<24x1xf32>
    %4 = arith.divf %2, %3 : vector<24x1xf32>
    %5 = vector.broadcast %4 : vector<24x1xf32> to vector<24x32xf32>
    %6 = arith.subf %0, %5 : vector<24x32xf32>
    %7 = arith.mulf %6, %6 : vector<24x32xf32>
    %cst_2 = arith.constant dense<0.000000e+00> : vector<24xf32>
    %8 = vector.multi_reduction <add>, %7, %cst_2 [1] : vector<24x32xf32> to vector<24xf32>
    %9 = vector.shape_cast %8 : vector<24xf32> to vector<24x1xf32>
    %cst_3 = arith.constant 3.200000e+01 : f32
    %10 = vector.broadcast %cst_3 : f32 to vector<24x1xf32>
    %11 = arith.divf %9, %10 : vector<24x1xf32>
    %12 = vector.broadcast %4 : vector<24x1xf32> to vector<24x32xf32>
    %13 = arith.subf %0, %12 : vector<24x32xf32>
    %cst_4 = arith.constant 9.99999996E-13 : f32
    %14 = vector.broadcast %cst_4 : f32 to vector<24x1xf32>
    %15 = arith.addf %11, %14 : vector<24x1xf32>
    %16 = math.rsqrt %15 : vector<24x1xf32>
    %17 = vector.broadcast %16 : vector<24x1xf32> to vector<24x32xf32>
    %18 = arith.mulf %13, %17 : vector<24x32xf32>
    %c0_5 = arith.constant 0 : index
    %c0_6 = arith.constant 0 : index
    %19 = vector.load %arg2[%c0_5, %c0_6] : memref<1x32xf32, #tpu.memory_space<vmem>>, vector<1x32xf32>
    %20 = vector.broadcast %19 : vector<1x32xf32> to vector<24x32xf32>
    %21 = arith.mulf %18, %20 : vector<24x32xf32>
    %c0_7 = arith.constant 0 : index
    %c0_8 = arith.constant 0 : index
    %22 = vector.load %arg3[%c0_7, %c0_8] : memref<1x32xf32, #tpu.memory_space<vmem>>, vector<1x32xf32>
    %23 = vector.broadcast %22 : vector<1x32xf32> to vector<24x32xf32>
    %24 = arith.addf %21, %23 : vector<24x32xf32>
    %c0_9 = arith.constant 0 : index
    %c0_10 = arith.constant 0 : index
    %25 = vector.load %arg4[%c0_9, %c0_10] : memref<24x32xf32, #tpu.memory_space<vmem>>, vector<24x32xf32>
    tpu.vector_store %arg4[%c0_9, %c0_10], %24 {strides = array<i32>} : memref<24x32xf32, #tpu.memory_space<vmem>>, vector<24x32xf32>,
    return
  }
  func.func @transform_0(%arg0: i32) -> (i32, i32) {
    %c0_i32 = arith.constant 0 : i32
    %c0_i32_0 = arith.constant 0 : i32
    return %arg0, %c0_i32 : i32, i32
  }
  func.func @transform_1(%arg0: i32) -> (i32, i32) {
    %c0_i32 = arith.constant 0 : i32
    %c0_i32_0 = arith.constant 0 : i32
    %c0_i32_1 = arith.constant 0 : i32
    return %c0_i32, %c0_i32_0 : i32, i32
  }
  func.func @transform_2(%arg0: i32) -> (i32, i32) {
    %c0_i32 = arith.constant 0 : i32
    %c0_i32_0 = arith.constant 0 : i32
    %c0_i32_1 = arith.constant 0 : i32
    return %c0_i32, %c0_i32_0 : i32, i32
  }
  func.func @transform_3(%arg0: i32) -> (i32, i32) {
    %c0_i32 = arith.constant 0 : i32
    %c0_i32_0 = arith.constant 0 : i32
    return %arg0, %c0_i32 : i32, i32
  }
}

</mosaic_0001>

<bundles_post_ra>
// kernel: tpu_custom_call.1
= control target key start
LH: loop header
LB: loop body
LE: loop exit
PB: predicated region body
PF: predicated region fallthrough
CT: control target
= control target key end

     0   :  { %8 = vsyncpa [#allocation3], 0  ;;  %s242_s0 = inlined_call_operand.hbm [shape: f32[24,32], index: 0, kind: input, shape index: {}]   ;;  %s243_s1 = inlined_call_operand.vmem [shape: f32[1,32], index: 1, kind: input, shape index: {}]   ;;  %s244_s2 = inlined_call_operand.vmem [shape: f32[1,32], index: 2, kind: input, shape index: {}]   ;;  %s245_s3 = inlined_call_operand.hbm [shape: f32[24,32], index: 3, kind: output, shape index: {}]  }
   0x1   :  { %9 = vsyncpa [#allocation4], 0  ;;  %s173_s12 = smov [#allocation2]   ;;  %s125_s16 = scalar_lea.hbm %s242_s0, 384 }
   0x2   :  { %s15_s13 = sshll.u32 %s173_s12, 4  ;;  %p126_p0 = scmp.ne.s32.totalorder %s242_s0, %s125_s16  ;;  %s16_s13 = int_to_ptr.vmem [resolvable:$true] %s15_s13 }
   0x3   :  { %p129_p1 = scmp.lt.u32.totalorder %s125_s16, %s242_s0 }
   0x5   :  { %p131_p2 = pnand %p129_p1, %p126_p0 }
   0x7   :  { %134 = shalt.err (!%p131_p2)
}
   0x8   :  { %s135_s21 = scalar_lea.vmem %s16_s13, 384  ;;  %p140_p4 = scmp.lt.s32.totalorder %s16_s13, %s16_s13 }
   0x9   :  { %p136_p3 = scmp.ne.s32.totalorder %s16_s13, %s135_s21  ;;  %p141_p5 = scmp.lt.s32.totalorder %s135_s21, %s135_s21 }
   0xb   :  { %p142_p6 = por %p141_p5, %p140_p4 }
   0xd   :  { %p143_p7 = pnand %p142_p6, %p136_p3 }
   0xf   :  { %146 = shalt.err (!%p143_p7)
}
  0x10   :  { %s174_s22 = smov 128   ;;  %s175_s23 = smov 8  }
  0x11   :  { %21 = dma.hbm_to_vmem [thread:$0]  %s242_s0, 384, %s16_s13, [#allocation3], %s174_s22, %s174_s22, %s175_s23  }
  0x12   :  { %169 = dma.done.wait [#allocation3], 384  }
  0x13   :  { %170 = vsyncadd [#allocation3], 4294966912  ;;  %vm32_vm0 = vcmask 261120   ;;  %v29_v0 = vld [vmem:[#allocation2] sm:$0xff]  ;;  %v31_v1 = vld [vmem:[#allocation2 + $0x10] sm:$0xff]  ;;  %s176_s29 = smov [#allocation5]  }
  0x14   :  { %v30_v2 = vld [vmem:[#allocation2 + $0x8] sm:$0xff]  ;;  %v33_v3 = vsel %vm32_vm0, %v29_v0, 0.0  ;;  %v39_v4 = vsel %vm32_vm0, %v31_v1, 0.0  ;;  %v113_v31 = vld [vmem:[%s243_s1] ss:$0 sm:$0xff]  ;;  %s101_s30 = sshll.u32 %s176_s29, 4  ;;  %s102_s30 = int_to_ptr.vmem [resolvable:$true] %s101_s30 }
  0x15   :  { %34 = vadd.xlane.f32.xlu0 %v33_v3  ;;  %40 = vadd.xlane.f32.xlu1 %v39_v4  ;;  %v36_v5 = vsel %vm32_vm0, %v30_v2, 0.0  ;;  %v114_v33 = vld [vmem:[%s244_s2] ss:$0 sm:$0xff]  ;;  %s147_s1 = scalar_lea.vmem %s102_s30, 384  ;;  %p152_p9 = scmp.lt.s32.totalorder %s102_s30, %s102_s30 }
  0x16   :  { %p148_p8 = scmp.ne.s32.totalorder %s102_s30, %s147_s1  ;;  %p153_p10 = scmp.lt.s32.totalorder %s147_s1, %s147_s1 }
  0x18   :  { %p154_p11 = por %p153_p10, %p152_p9 }
  0x19   :  { %37 = vadd.xlane.f32.xlu0 %v36_v5 }
  0x1a   :  { %p155_p12 = pnand %p154_p11, %p148_p8 }
  0xa2   :  { %v35_v6 = vpop.xlane.xlu0 %34  ;;  %v41_v7 = vpop.xlane.xlu1 %40 }
  0xa3   :  { %v43_v8 = vmul.f32 0.03125, %v35_v6  ;;  %v45_v9 = vmul.f32 0.03125, %v41_v7 }
  0xa5   :  { %v46_v10 = vsub.f32 %v29_v0, %v43_v8  ;;  %v48_v11 = vsub.f32 %v31_v1, %v45_v9 }
  0xa6   :  { %v38_v12 = vpop.xlane.xlu0 %37 }
  0xa7   :  { %v44_v13 = vmul.f32 0.03125, %v38_v12  ;;  %v49_v14 = vmul.f32 %v46_v10, %v46_v10  ;;  %v51_v15 = vmul.f32 %v48_v11, %v48_v11 }
  0xa9   :  { %v47_v16 = vsub.f32 %v30_v2, %v44_v13  ;;  %v52_v17 = vsel %vm32_vm0, %v49_v14, 0.0  ;;  %v58_v18 = vsel %vm32_vm0, %v51_v15, 0.0 }
  0xaa   :  { %53 = vadd.xlane.f32.xlu1 %v52_v17 }
  0xab   :  { %v50_v19 = vmul.f32 %v47_v16, %v47_v16 }
  0xad   :  { %v55_v20 = vsel %vm32_vm0, %v50_v19, 0.0 }
  0xae   :  { %59 = vadd.xlane.f32.xlu1 %v58_v18  ;;  %56 = vadd.xlane.f32.xlu0 %v55_v20 }
 0x137   :  { %v54_v21 = vpop.xlane.xlu1 %53 }
 0x138   :  { %v61_v22 = vmul.f32 0.03125, %v54_v21 }
 0x13a   :  { %v64_v23 = vadd.f32 1e-12, %v61_v22 }
 0x13b   :  { %v60_v24 = vpop.xlane.xlu1 %59  ;;  %v57_v25 = vpop.xlane.xlu0 %56 }
 0x13c   :  { %119 = vrsqrt.f32 %v64_v23  ;;  %v63_v26 = vmul.f32 0.03125, %v60_v24  ;;  %v62_v27 = vmul.f32 0.03125, %v57_v25 }
 0x13e   :  { %v66_v28 = vadd.f32 1e-12, %v63_v26  ;;  %v65_v29 = vadd.f32 1e-12, %v62_v27 }
 0x140   :  { %121 = vrsqrt.f32 %v66_v28 }
 0x141   :  { %123 = vrsqrt.f32 %v65_v29 }
 0x146   :  { %v120_v30 = vpop.eup %119 }
 0x147   :  { %v70_v32 = vmul.f32 %v120_v30, %v46_v10 }
 0x149   :  { %v80_v34 = vmul.f32 %v113_v31, %v70_v32 }
 0x14a   :  { %v122_v35 = vpop.eup %121 }
 0x14b   :  { %v124_v36 = vpop.eup %123  ;;  %v72_v37 = vmul.f32 %v122_v35, %v48_v11  ;;  %v90_v38 = vadd.f32 %v114_v33, %v80_v34 }
 0x14c   :  { %v71_v39 = vmul.f32 %v124_v36, %v47_v16 }
 0x14d   :  { %v82_v40 = vmul.f32 %v113_v31, %v72_v37  ;;  %93 = vst.msk [vmem:[#allocation5] sm:$0xff] %vm32_vm0, %v90_v38 }
 0x14e   :  { %v81_v41 = vmul.f32 %v113_v31, %v71_v39 }
 0x14f   :  { %v92_v42 = vadd.f32 %v114_v33, %v82_v40 }
 0x150   :  { %v91_v43 = vadd.f32 %v114_v33, %v81_v41 }
 0x151   :  { %95 = vst.msk [vmem:[#allocation5 + $0x10] sm:$0xff] %vm32_vm0, %v92_v42 }
 0x152   :  { %94 = vst.msk [vmem:[#allocation5 + $0x8] sm:$0xff] %vm32_vm0, %v91_v43 }
 0x153   :  { %158 = shalt.err (!%p155_p12)
}
 0x154   :  { %s159_s5 = scalar_lea.hbm %s245_s3, 384 }
 0x155   :  { %p160_p13 = scmp.ne.s32.totalorder %s245_s3, %s159_s5  ;;  %p163_p0 = scmp.lt.u32.totalorder %s159_s5, %s245_s3 }
 0x157   :  { %p165_p1 = pnand %p163_p0, %p160_p13 }
 0x159   :  { %168 = shalt.err (!%p165_p1)
}
 0x15a   :  { %107 = dma.vmem_to_hbm [thread:$0]  %s102_s30, 384, %s245_s3, [#allocation4], %s174_s22, %s174_s22, %s175_s23  }
 0x15b   :  { %171 = dma.done.wait [#allocation4], 384  }
 0x15c   :  { %172 = vsyncadd [#allocation4], 4294966912 }
 0x15d   :  { %111 = vsyncpa [#allocation3], 1 }
 0x15e   :  { %112 = vsyncpa [#allocation4], 1 }

</bundles_post_ra>
